<compile_context>
chip_gen: v6e
topology: v6e:2x2x1
jax: 0.10.0
libtpu: 0.0.40
codegen_flags: <defaults>
</compile_context>

<pallas_src>
import jax
import jax.numpy as jnp
from jax.experimental import pallas as pl
from jax.experimental.pallas import tpu as pltpu


def _gnn_layer_kernel(A_ref, W_ref, x_ref,
                      wn1_ref, bn1_ref, wn2_ref, bn2_ref,
                      ws1_ref, bs1_ref, ws2_ref, bs2_ref,
                      out_ref):
    Bb, N, _ = A_ref.shape
    Fn = x_ref.shape[-1]
    C = wn2_ref.shape[-1]

    # --- p=1 row normalization of A (A is a non-negative 0/1 adjacency) ---
    # Guarded reciprocal of the tiny (Bb, N, 1) row-sum vector; no full-matrix
    # divide / isnan / where.  Matches F.normalize(A, p=1, dim=2) for A >= 0.
    A = A_ref[...]                                          # (Bb, N, N) f32
    row_sum = jnp.sum(A, axis=-1, keepdims=True)            # (Bb, N, 1)
    inv = jnp.where(row_sum > 0.0, 1.0 / row_sum, 0.0)
    A_norm = A * inv                                        # (Bb, N, N)

    # --- two-layer MLPs on the fused (Bb*N, Fn) slab, bf16 in / f32 accum ---
    x2d = x_ref[...].reshape(Bb * N, Fn)                    # bf16

    def mlp(v, w1_ref, b1_ref, w2_ref, b2_ref):
        h = jnp.maximum(
            jnp.dot(v, w1_ref[...], preferred_element_type=jnp.float32)
            + b1_ref[...], 0.0)
        h = h.astype(w2_ref.dtype)                          # keep MXU in bf16
        return jnp.maximum(
            jnp.dot(h, w2_ref[...], preferred_element_type=jnp.float32)
            + b2_ref[...], 0.0)                             # f32

    x1 = mlp(x2d, wn1_ref, bn1_ref, wn2_ref, bn2_ref).reshape(Bb, N, C)
    xs = mlp(x2d, ws1_ref, bs1_ref, ws2_ref, bs2_ref).reshape(Bb, N, C)

    # --- per-channel weighted aggregation (no transposes, sublane reduce) ---
    # x2[b,i,c] = sum_j A_norm[b,i,j] * W[b,i,j,c] * x1[b,j,c]
    agg = jnp.sum(A_norm[..., None] * W_ref[...] * x1[:, None, :, :], axis=2)

    out_ref[...] = (agg + xs).astype(out_ref.dtype)


def gnn_layer_forward(A, W, x, params, *, batch_block=1):
    """GNNLayer forward (edge_emb=False, sk_channel=0, norm=True).

    A: (B, N, N) 0/1 adjacency (f32)
    W: (B, N, N, C) edge features (bf16), C == out_node_features
    x: (B, N, Fn) node features (bf16)
    Returns (W_new, x_new) with W_new = W (e_func is None).
    """
    B, N, _ = A.shape
    C = W.shape[-1]
    Fn = x.shape[-1]
    Bb = batch_block
    assert B % Bb == 0, "batch_block must divide the batch size"

    def full(arr):
        return pl.BlockSpec(arr.shape, lambda b, _nd=arr.ndim: (0,) * _nd)

    x_new = pl.pallas_call(
        _gnn_layer_kernel,
        out_shape=jax.ShapeDtypeStruct((B, N, C), jnp.float32),
        grid_spec=pltpu.PrefetchScalarGridSpec(
            num_scalar_prefetch=0,
            grid=(B // Bb,),
            in_specs=[
                pl.BlockSpec((Bb, N, N), lambda b: (b, 0, 0)),        # A
                pl.BlockSpec((Bb, N, N, C), lambda b: (b, 0, 0, 0)),  # W
                pl.BlockSpec((Bb, N, Fn), lambda b: (b, 0, 0)),       # x
                full(params["wn1"]), full(params["bn1"]),
                full(params["wn2"]), full(params["bn2"]),
                full(params["ws1"]), full(params["bs1"]),
                full(params["ws2"]), full(params["bs2"]),
            ],
            out_specs=pl.BlockSpec((Bb, N, C), lambda b: (b, 0, 0)),
        ),
        compiler_params=pltpu.CompilerParams(
            dimension_semantics=("parallel",),          # batch sharded across TCs
            vmem_limit_bytes=32 * 1024 * 1024),         # safe on v5e/v6e/v7x
    )(A, W, x,
      params["wn1"], params["bn1"], params["wn2"], params["bn2"],
      params["ws1"], params["bs1"], params["ws2"], params["bs2"])

    return W, x_new   # e_func is None -> W_new is a passthrough of W


def init_params(key, in_nfeat, out_nfeat, dtype=jnp.bfloat16):
    """Synthetic params. PyTorch Linear stores (out, in); we store (in, out)
    so the kernel computes x @ W + b directly. Weights bf16, biases f32."""
    ks = jax.random.split(key, 8)
    s = 0.1

    def lin(kw, kb, fin, fout):
        w = (s * jax.random.normal(kw, (fin, fout), jnp.float32)).astype(dtype)
        b = s * jax.random.normal(kb, (1, fout), jnp.float32)
        return w, b

    wn1, bn1 = lin(ks[0], ks[1], in_nfeat, out_nfeat)   # n_func layer 1
    wn2, bn2 = lin(ks[2], ks[3], out_nfeat, out_nfeat)  # n_func layer 2
    ws1, bs1 = lin(ks[4], ks[5], in_nfeat, out_nfeat)   # n_self_func layer 1
    ws2, bs2 = lin(ks[6], ks[7], out_nfeat, out_nfeat)  # n_self_func layer 2
    return dict(wn1=wn1, bn1=bn1, wn2=wn2, bn2=bn2,
                ws1=ws1, bs1=bs1, ws2=ws2, bs2=bs2)


def reference_forward(A, W, x, params):
    """Pure-JAX reference mirroring GNNLayer.forward (edge_emb=False, sk=0)."""
    row_sum = jnp.sum(A, axis=-1, keepdims=True)
    inv = jnp.where(row_sum > 0.0, 1.0 / row_sum, 0.0)
    A_norm = A * inv                                   # F.normalize(A, p=1, dim=2)

    def mlp(v, w1, b1, w2, b2):
        h = jax.nn.relu(jnp.dot(v, w1, preferred_element_type=jnp.float32) + b1)
        h = h.astype(w2.dtype)
        return jax.nn.relu(jnp.dot(h, w2, preferred_element_type=jnp.float32) + b2)

    x1 = mlp(x, params["wn1"], params["bn1"], params["wn2"], params["bn2"])
    xs = mlp(x, params["ws1"], params["bs1"], params["ws2"], params["bs2"])

    # torch: matmul((A*W).permute(0,3,1,2), x1.unsqueeze(2).permute(0,3,1,2))
    #        .squeeze(-1).transpose(1,2)  ==  sum_j A[b,i,j]*W[b,i,j,c]*x1[b,j,c]
    agg = jnp.sum(A_norm[..., None] * W * x1[:, None, :, :], axis=2)
    x_new = agg + xs
    return W, x_new


if __name__ == "__main__":
    # Small shapes: batch=2, nodes=16, in_node_feat=32,
    # in_edge_feat = out_node_feat = out_edge_feat = 128 (lane-dense outputs).
    B, N = 2, 16
    IN_NF, C = 32, 128

    key = jax.random.PRNGKey(0)
    kA, kW, kx, kp = jax.random.split(key, 4)

    A = (jax.random.uniform(kA, (B, N, N)) > 0.5).astype(jnp.float32)
    A = A.at[:, 0, :].set(0.0)   # all-zero row exercises the normalization guard
    W = jax.random.normal(kW, (B, N, N, C), jnp.float32).astype(jnp.bfloat16)
    x = jax.random.normal(kx, (B, N, IN_NF), jnp.float32).astype(jnp.bfloat16)

    params = init_params(kp, IN_NF, C)

    W_new, x_new = gnn_layer_forward(A, W, x, params, batch_block=1)
    jax.block_until_ready((W_new, x_new))

    ref_W, ref_x = reference_forward(A, W, x, params)
    assert W_new.shape == (B, N, N, C) and x_new.shape == (B, N, C)
    assert jnp.array_equal(W_new, ref_W)
    err = float(jnp.max(jnp.abs(x_new - ref_x.astype(jnp.float32))))
    assert jnp.allclose(x_new, ref_x.astype(jnp.float32), atol=1e-2, rtol=1e-2), err

    print("KERNEL_OK")
</pallas_src>

<mosaic_0001>
module attributes {stable_mosaic.version = 11 : i64} {
  func.func @_gnn_layer_kernel(%arg0: i32, %arg1: memref<1x16x16xf32, #tpu.memory_space<vmem>>, %arg2: memref<1x16x16x128xbf16, #tpu.memory_space<vmem>>, %arg3: memref<1x16x32xbf16, #tpu.memory_space<vmem>>, %arg4: memref<32x128xbf16, #tpu.memory_space<vmem>>, %arg5: memref<1x128xf32, #tpu.memory_space<vmem>>, %arg6: memref<128x128xbf16, #tpu.memory_space<vmem>>, %arg7: memref<1x128xf32, #tpu.memory_space<vmem>>, %arg8: memref<32x128xbf16, #tpu.memory_space<vmem>>, %arg9: memref<1x128xf32, #tpu.memory_space<vmem>>, %arg10: memref<128x128xbf16, #tpu.memory_space<vmem>>, %arg11: memref<1x128xf32, #tpu.memory_space<vmem>>, %arg12: memref<1x16x128xf32, #tpu.memory_space<vmem>>) attributes {dimension_semantics = [#tpu.dimension_semantics<parallel>], iteration_bounds = array<i64: 2>, scalar_prefetch = 0 : i64, scratch_operands = 0 : i64, tpu.core_type = #tpu.core_type<tc>, window_params = [{transform_indices = @transform_0, window_bounds = array<i64: 1, 16, 16>}, {transform_indices = @transform_1, window_bounds = array<i64: 1, 16, 16, 128>}, {transform_indices = @transform_2, window_bounds = array<i64: 1, 16, 32>}, {pipeline_mode = #tpu.pipeline_mode<synchronous>, transform_indices = @transform_3, window_bounds = array<i64: 32, 128>}, {pipeline_mode = #tpu.pipeline_mode<synchronous>, transform_indices = @transform_4, window_bounds = array<i64: 1, 128>}, {pipeline_mode = #tpu.pipeline_mode<synchronous>, transform_indices = @transform_5, window_bounds = array<i64: 128, 128>}, {pipeline_mode = #tpu.pipeline_mode<synchronous>, transform_indices = @transform_6, window_bounds = array<i64: 1, 128>}, {pipeline_mode = #tpu.pipeline_mode<synchronous>, transform_indices = @transform_7, window_bounds = array<i64: 32, 128>}, {pipeline_mode = #tpu.pipeline_mode<synchronous>, transform_indices = @transform_8, window_bounds = array<i64: 1, 128>}, {pipeline_mode = #tpu.pipeline_mode<synchronous>, transform_indices = @transform_9, window_bounds = array<i64: 128, 128>}, {pipeline_mode = #tpu.pipeline_mode<synchronous>, transform_indices = @transform_10, window_bounds = array<i64: 1, 128>}, {transform_indices = @transform_11, window_bounds = array<i64: 1, 16, 128>}]} {
    %c0 = arith.constant 0 : index
    %c0_0 = arith.constant 0 : index
    %c0_1 = arith.constant 0 : index
    %0 = vector.load %arg1[%c0, %c0_0, %c0_1] : memref<1x16x16xf32, #tpu.memory_space<vmem>>, vector<1x16x16xf32>
    %cst = arith.constant dense<0.000000e+00> : vector<1x16xf32>
    %1 = vector.multi_reduction <add>, %0, %cst [2] : vector<1x16x16xf32> to vector<1x16xf32>
    %2 = vector.shape_cast %1 : vector<1x16xf32> to vector<1x16x1xf32>
    %cst_2 = arith.constant 0.000000e+00 : f32
    %3 = vector.broadcast %cst_2 : f32 to vector<1x16x1xf32>
    %4 = arith.cmpf ogt, %2, %3 : vector<1x16x1xf32>
    %cst_3 = arith.constant 1.000000e+00 : f32
    %5 = vector.broadcast %cst_3 : f32 to vector<1x16x1xf32>
    %6 = arith.divf %5, %2 : vector<1x16x1xf32>
    %cst_4 = arith.constant 0.000000e+00 : f32
    %7 = vector.broadcast %cst_4 : f32 to vector<1x16x1xf32>
    %8 = arith.select %4, %6, %7 : vector<1x16x1xi1>, vector<1x16x1xf32>
    %9 = vector.broadcast %8 : vector<1x16x1xf32> to vector<1x16x16xf32>
    %10 = arith.mulf %0, %9 : vector<1x16x16xf32>
    %c0_5 = arith.constant 0 : index
    %c0_6 = arith.constant 0 : index
    %c0_7 = arith.constant 0 : index
    %11 = vector.load %arg3[%c0_5, %c0_6, %c0_7] : memref<1x16x32xbf16, #tpu.memory_space<vmem>>, vector<1x16x32xbf16>
    %12 = vector.shape_cast %11 : vector<1x16x32xbf16> to vector<16x32xbf16>
    %c0_8 = arith.constant 0 : index
    %c0_9 = arith.constant 0 : index
    %13 = vector.load %arg4[%c0_8, %c0_9] : memref<32x128xbf16, #tpu.memory_space<vmem>>, vector<32x128xbf16>
    %cst_10 = arith.constant dense<0.000000e+00> : vector<16x128xf32>
    %14 = tpu.matmul %12, %13, %cst_10 {dimension_numbers = #tpu.dot_dimension_numbers<[1], [0], [0], [1], [0, 0, 1, 1], [], []>} : vector<16x32xbf16>, vector<32x128xbf16>, vector<16x128xf32> -> vector<16x128xf32>
    %c0_11 = arith.constant 0 : index
    %c0_12 = arith.constant 0 : index
    %15 = vector.load %arg5[%c0_11, %c0_12] : memref<1x128xf32, #tpu.memory_space<vmem>>, vector<1x128xf32>
    %16 = vector.broadcast %15 : vector<1x128xf32> to vector<16x128xf32>
    %17 = arith.addf %14, %16 : vector<16x128xf32>
    %cst_13 = arith.constant 0.000000e+00 : f32
    %18 = vector.broadcast %cst_13 : f32 to vector<16x128xf32>
    %19 = arith.maximumf %17, %18 : vector<16x128xf32>
    %20 = arith.truncf %19 : vector<16x128xf32> to vector<16x128xbf16>
    %c0_14 = arith.constant 0 : index
    %c0_15 = arith.constant 0 : index
    %21 = vector.load %arg6[%c0_14, %c0_15] : memref<128x128xbf16, #tpu.memory_space<vmem>>, vector<128x128xbf16>
    %cst_16 = arith.constant dense<0.000000e+00> : vector<16x128xf32>
    %22 = tpu.matmul %20, %21, %cst_16 {dimension_numbers = #tpu.dot_dimension_numbers<[1], [0], [0], [1], [0, 0, 1, 1], [], []>} : vector<16x128xbf16>, vector<128x128xbf16>, vector<16x128xf32> -> vector<16x128xf32>
    %c0_17 = arith.constant 0 : index
    %c0_18 = arith.constant 0 : index
    %23 = vector.load %arg7[%c0_17, %c0_18] : memref<1x128xf32, #tpu.memory_space<vmem>>, vector<1x128xf32>
    %24 = vector.broadcast %23 : vector<1x128xf32> to vector<16x128xf32>
    %25 = arith.addf %22, %24 : vector<16x128xf32>
    %cst_19 = arith.constant 0.000000e+00 : f32
    %26 = vector.broadcast %cst_19 : f32 to vector<16x128xf32>
    %27 = arith.maximumf %25, %26 : vector<16x128xf32>
    %28 = vector.shape_cast %27 : vector<16x128xf32> to vector<1x16x128xf32>
    %c0_20 = arith.constant 0 : index
    %c0_21 = arith.constant 0 : index
    %29 = vector.load %arg8[%c0_20, %c0_21] : memref<32x128xbf16, #tpu.memory_space<vmem>>, vector<32x128xbf16>
    %cst_22 = arith.constant dense<0.000000e+00> : vector<16x128xf32>
    %30 = tpu.matmul %12, %29, %cst_22 {dimension_numbers = #tpu.dot_dimension_numbers<[1], [0], [0], [1], [0, 0, 1, 1], [], []>} : vector<16x32xbf16>, vector<32x128xbf16>, vector<16x128xf32> -> vector<16x128xf32>
    %c0_23 = arith.constant 0 : index
    %c0_24 = arith.constant 0 : index
    %31 = vector.load %arg9[%c0_23, %c0_24] : memref<1x128xf32, #tpu.memory_space<vmem>>, vector<1x128xf32>
    %32 = vector.broadcast %31 : vector<1x128xf32> to vector<16x128xf32>
    %33 = arith.addf %30, %32 : vector<16x128xf32>
    %cst_25 = arith.constant 0.000000e+00 : f32
    %34 = vector.broadcast %cst_25 : f32 to vector<16x128xf32>
    %35 = arith.maximumf %33, %34 : vector<16x128xf32>
    %36 = arith.truncf %35 : vector<16x128xf32> to vector<16x128xbf16>
    %c0_26 = arith.constant 0 : index
    %c0_27 = arith.constant 0 : index
    %37 = vector.load %arg10[%c0_26, %c0_27] : memref<128x128xbf16, #tpu.memory_space<vmem>>, vector<128x128xbf16>
    %cst_28 = arith.constant dense<0.000000e+00> : vector<16x128xf32>
    %38 = tpu.matmul %36, %37, %cst_28 {dimension_numbers = #tpu.dot_dimension_numbers<[1], [0], [0], [1], [0, 0, 1, 1], [], []>} : vector<16x128xbf16>, vector<128x128xbf16>, vector<16x128xf32> -> vector<16x128xf32>
    %c0_29 = arith.constant 0 : index
    %c0_30 = arith.constant 0 : index
    %39 = vector.load %arg11[%c0_29, %c0_30] : memref<1x128xf32, #tpu.memory_space<vmem>>, vector<1x128xf32>
    %40 = vector.broadcast %39 : vector<1x128xf32> to vector<16x128xf32>
    %41 = arith.addf %38, %40 : vector<16x128xf32>
    %cst_31 = arith.constant 0.000000e+00 : f32
    %42 = vector.broadcast %cst_31 : f32 to vector<16x128xf32>
    %43 = arith.maximumf %41, %42 : vector<16x128xf32>
    %44 = vector.shape_cast %43 : vector<16x128xf32> to vector<1x16x128xf32>
    %45 = vector.shape_cast %10 : vector<1x16x16xf32> to vector<1x16x16x1xf32>
    %c0_32 = arith.constant 0 : index
    %c0_33 = arith.constant 0 : index
    %c0_34 = arith.constant 0 : index
    %c0_35 = arith.constant 0 : index
    %46 = vector.load %arg2[%c0_32, %c0_33, %c0_34, %c0_35] : memref<1x16x16x128xbf16, #tpu.memory_space<vmem>>, vector<1x16x16x128xbf16>
    %47 = arith.extf %46 : vector<1x16x16x128xbf16> to vector<1x16x16x128xf32>
    %48 = vector.broadcast %45 : vector<1x16x16x1xf32> to vector<1x16x16x128xf32>
    %49 = arith.mulf %48, %47 : vector<1x16x16x128xf32>
    %50 = vector.shape_cast %28 : vector<1x16x128xf32> to vector<1x1x16x128xf32>
    %51 = vector.broadcast %50 : vector<1x1x16x128xf32> to vector<1x16x16x128xf32>
    %52 = arith.mulf %49, %51 : vector<1x16x16x128xf32>
    %cst_36 = arith.constant dense<0.000000e+00> : vector<1x16x128xf32>
    %53 = vector.multi_reduction <add>, %52, %cst_36 [2] : vector<1x16x16x128xf32> to vector<1x16x128xf32>
    %54 = arith.addf %53, %44 : vector<1x16x128xf32>
    %c0_37 = arith.constant 0 : index
    %c0_38 = arith.constant 0 : index
    %c0_39 = arith.constant 0 : index
    %55 = vector.load %arg12[%c0_37, %c0_38, %c0_39] : memref<1x16x128xf32, #tpu.memory_space<vmem>>, vector<1x16x128xf32>
    tpu.vector_store %arg12[%c0_37, %c0_38, %c0_39], %54 {strides = array<i32>} : memref<1x16x128xf32, #tpu.memory_space<vmem>>, vector<1x16x128xf32>,
    return
  }
  func.func @transform_0(%arg0: i32) -> (i32, i32, i32) {
    %c0_i32 = arith.constant 0 : i32
    %c0_i32_0 = arith.constant 0 : i32
    %c0_i32_1 = arith.constant 0 : i32
    return %arg0, %c0_i32, %c0_i32_0 : i32, i32, i32
  }
  func.func @transform_1(%arg0: i32) -> (i32, i32, i32, i32) {
    %c0_i32 = arith.constant 0 : i32
    %c0_i32_0 = arith.constant 0 : i32
    %c0_i32_1 = arith.constant 0 : i32
    %c0_i32_2 = arith.constant 0 : i32
    return %arg0, %c0_i32, %c0_i32_0, %c0_i32_1 : i32, i32, i32, i32
  }
  func.func @transform_2(%arg0: i32) -> (i32, i32, i32) {
    %c0_i32 = arith.constant 0 : i32
    %c0_i32_0 = arith.constant 0 : i32
    %c0_i32_1 = arith.constant 0 : i32
    return %arg0, %c0_i32, %c0_i32_0 : i32, i32, i32
  }
  func.func @transform_3(%arg0: i32) -> (i32, i32) {
    %c0_i32 = arith.constant 0 : i32
    %c0_i32_0 = arith.constant 0 : i32
    %c0_i32_1 = arith.constant 0 : i32
    return %c0_i32, %c0_i32_0 : i32, i32
  }
  func.func @transform_4(%arg0: i32) -> (i32, i32) {
    %c0_i32 = arith.constant 0 : i32
    %c0_i32_0 = arith.constant 0 : i32
    %c0_i32_1 = arith.constant 0 : i32
    return %c0_i32, %c0_i32_0 : i32, i32
  }
  func.func @transform_5(%arg0: i32) -> (i32, i32) {
    %c0_i32 = arith.constant 0 : i32
    %c0_i32_0 = arith.constant 0 : i32
    %c0_i32_1 = arith.constant 0 : i32
    return %c0_i32, %c0_i32_0 : i32, i32
  }
  func.func @transform_6(%arg0: i32) -> (i32, i32) {
    %c0_i32 = arith.constant 0 : i32
    %c0_i32_0 = arith.constant 0 : i32
    %c0_i32_1 = arith.constant 0 : i32
    return %c0_i32, %c0_i32_0 : i32, i32
  }
  func.func @transform_7(%arg0: i32) -> (i32, i32) {
    %c0_i32 = arith.constant 0 : i32
    %c0_i32_0 = arith.constant 0 : i32
    %c0_i32_1 = arith.constant 0 : i32
    return %c0_i32, %c0_i32_0 : i32, i32
  }
  func.func @transform_8(%arg0: i32) -> (i32, i32) {
    %c0_i32 = arith.constant 0 : i32
    %c0_i32_0 = arith.constant 0 : i32
    %c0_i32_1 = arith.constant 0 : i32
    return %c0_i32, %c0_i32_0 : i32, i32
  }
  func.func @transform_9(%arg0: i32) -> (i32, i32) {
    %c0_i32 = arith.constant 0 : i32
    %c0_i32_0 = arith.constant 0 : i32
    %c0_i32_1 = arith.constant 0 : i32
    return %c0_i32, %c0_i32_0 : i32, i32
  }
  func.func @transform_10(%arg0: i32) -> (i32, i32) {
    %c0_i32 = arith.constant 0 : i32
    %c0_i32_0 = arith.constant 0 : i32
    %c0_i32_1 = arith.constant 0 : i32
    return %c0_i32, %c0_i32_0 : i32, i32
  }
  func.func @transform_11(%arg0: i32) -> (i32, i32, i32) {
    %c0_i32 = arith.constant 0 : i32
    %c0_i32_0 = arith.constant 0 : i32
    %c0_i32_1 = arith.constant 0 : i32
    return %arg0, %c0_i32, %c0_i32_0 : i32, i32, i32
  }
}

</mosaic_0001>

<bundles_post_ra>
// kernel: tpu_custom_call.1
= control target key start
LH: loop header
LB: loop body
LE: loop exit
PB: predicated region body
PF: predicated region fallthrough
CT: control target
= control target key end

     0   :  { %s2982_s0 = inlined_call_operand.hbm [shape: f32[2,16,16], index: 0, kind: input, shape index: {}]   ;;  %s2983_s1 = inlined_call_operand.hbm [shape: bf16[2,16,16,128], index: 1, kind: input, shape index: {}]   ;;  %s2984_s2 = inlined_call_operand.hbm [shape: bf16[2,16,32], index: 2, kind: input, shape index: {}]   ;;  %s2985_s3 = inlined_call_operand.hbm [shape: bf16[32,128], index: 3, kind: input, shape index: {}]   ;;  %s2986_s4 = inlined_call_operand.vmem [shape: f32[1,128], index: 4, kind: input, shape index: {}]   ;;  %s2987_s5 = inlined_call_operand.hbm [shape: bf16[128,128], index: 5, kind: input, shape index: {}]   ;;  %s2988_s6 = inlined_call_operand.vmem [shape: f32[1,128], index: 6, kind: input, shape index: {}]   ;;  %s2989_s7 = inlined_call_operand.hbm [shape: bf16[32,128], index: 7, kind: input, shape index: {}]   ;;  %s2990_s8 = inlined_call_operand.vmem [shape: f32[1,128], index: 8, kind: input, shape index: {}]   ;;  %s2991_s9 = inlined_call_operand.hbm [shape: bf16[128,128], index: 9, kind: input, shape index: {}]   ;;  %s2992_s10 = inlined_call_operand.vmem [shape: f32[1,128], index: 10, kind: input, shape index: {}]   ;;  %s2993_s11 = inlined_call_operand.hbm [shape: f32[2,16,128], index: 11, kind: output, shape index: {}]  }
   0x1   :  { %3011 = sst [smem:[#allocation32_spill]] %s2982_s0 }
   0x2   :  { %3012 = sst [smem:[#allocation33_spill]] %s2983_s1 }
   0x3   :  { %3013 = sst [smem:[#allocation34_spill]] %s2985_s3 }
   0x4   :  { %3014 = sst [smem:[#allocation35_spill]] %s2987_s5 }
   0x5   :  { %3015 = sst [smem:[#allocation36_spill]] %s2989_s7 }
   0x6   :  { %3016 = sst [smem:[#allocation37_spill]] %s2991_s9 }
   0x7   :  { %3017 = sst [smem:[#allocation38_spill]] %s2993_s11 }
   0x8   :  { %16 = vsyncpa [#allocation3], 0 }
   0x9   :  { %18 = vsyncpa [#allocation3 + $0x1], 0 }
   0xa   :  { %19 = vsyncpa [#allocation6], 0 }
   0xb   :  { %21 = vsyncpa [#allocation6 + $0x1], 0 }
   0xc   :  { %22 = vsyncpa [#allocation9], 0 }
   0xd   :  { %23 = vsyncpa [#allocation12], 0 }
   0xe   :  { %24 = vsyncpa [#allocation4], 0 }
   0xf   :  { %26 = vsyncpa [#allocation4 + $0x1], 0  ;;  %s2312_s17 = smov 0   ;;  %s2314_s18 = smov 0  }
  0x10   :  { %s2316_s19 = smov 0   ;;  %s2318_s20 = smov 0  }
  0x11 LB: > { %3018 = sst [smem:[#allocation20_spill]] %s2222_s17  ;;  %s2333_s21 = sadd.s32 4294967295, %s2234_s20   ;;  %s2234_s20 = sphi %s2318_s20, %s3067_s20   ;;  %s2230_s19 = sphi %s2316_s19, %s3069_s19   ;;  %s2226_s18 = sphi %s2314_s18, %s3071_s18   ;;  %s2222_s17 = sphi %s2312_s17, %s3070_s17  }
  0x12   : > { %3019 = sst [smem:[#allocation21_spill]] %s2230_s19  ;;  %s1620_s22 = sadd.s32 4294967294, %s2234_s20  }
  0x13   : > { %p52_p0 = scmp.ne.s32.totalorder %s2226_s18, %s2222_s17  ;;  %p3004_p1 = scmp.eq.s32.totalorder %s2333_s21, 0 }
  0x14   : > { %p296_p2 = scmp.eq.s32.totalorder %s2333_s21, 1  ;;  %p302_p3 = scmp.eq.s32.totalorder %s1620_s22, 1 }
  0x15   : > { %p2342_p4 = por %p3004_p1, %p52_p0  ;;  %p1621_p5 = scmp.ge.s32.totalorder %s2234_s20, 1 }
  0x16   : > { %p2347_p6 = por %p302_p3, %p52_p0  ;;  %p309_p7 = scmp.lt.s32.totalorder %s2234_s20, 3 }
  0x17   : > { %s3020_s23 = scalar_select %p2342_p4, 1, 0 }
  0x18   : > { %s3021_s24 = scalar_select %p2347_p6, 1, 0 }
  0x19   : > { %p2352_p8 = pnand %p1621_p5, %p309_p7  ;;  %s2236_s26 = smov [#allocation8]  }
  0x1a   : > { %3022 = sst [smem:[#allocation22_spill]] %s3021_s24  ;;  %s321_s27 = sshll.u32 %s2236_s26, 4  ;;  %s322_s27 = int_to_ptr.vmem [resolvable:$true] %s321_s27 }
  0x1b   : > { %s3023_s25 = scalar_select %p2352_p8, 1, 0 }
  0x1c   : > { %p1864_p9 = pneg %p2352_p8  ;;  %s2237_s29 = smov [#allocation11]  }
  0x1d   : > { %s353_s30 = sshll.u32 %s2237_s29, 4  ;;  %s1981_s12 = scalar_lea.vmem %s322_s27, 256  ;;  %s354_s30 = int_to_ptr.vmem [resolvable:$true] %s353_s30 }
  0x1e   : > { %p2361_p11 = pnand %p1864_p9, %p3004_p1  ;;  %p1982_p13 = scmp.ne.s32.totalorder %s322_s27, %s1981_s12 }
  0x1f   : > { %p1989_p5 = scmp.lt.s32.totalorder %s322_s27, %s322_s27  ;;  %p1990_p7 = scmp.lt.s32.totalorder %s1981_s12, %s1981_s12 }
  0x20   : > { %s3024_s28 = scalar_select %p2361_p11, 1, 0 }
  0x21   : > { %p3005_p12 = pneg %p2361_p11  ;;  %p1991_p10 = por %p1990_p7, %p1989_p5 }
  0x23   : > { %p1984_p0 = pnand %p1982_p13, %p3005_p12 }
  0x25   : > { %p1985_p3 = pneg %p1984_p0 }
  0x27   : > { %p1992_p9 = pnand %p1991_p10, %p1985_p3 }
  0x29   : > { %1995 = shalt.err (!%p1992_p9)
}
  0x2a   : > { %s2994_s13 = smov 64   ;;  %s2996_s14 = smov 4  }
  0x2b   : > { %s3025_s3 = sld [smem:[#allocation34_spill]]  ;;  %s2007_s22 = scalar_lea.vmem %s354_s30, 256 }
  0x2c   : > { %p2008_p13 = scmp.ne.s32.totalorder %s354_s30, %s2007_s22  ;;  %p2015_p10 = scmp.lt.s32.totalorder %s354_s30, %s354_s30 }
  0x2d   : > { %p2016_p3 = scmp.lt.s32.totalorder %s2007_s22, %s2007_s22 }
  0x2e   : > { %p2010_p0 = pnand %p2008_p13, %p3005_p12 }
  0x2f   : > { %p2017_p7 = por %p2016_p3, %p2015_p10 }
  0x30   : > { %p2011_p5 = pneg %p2010_p0 }
  0x31   : > { %1867 = dma.hbm_to_vmem [thread:$0]  (!%p2361_p11), %s3025_s3, 256, %s322_s27, [#allocation9], %s2994_s13, %s2994_s13, %s2996_s14  }
  0x32   : > { %p2018_p9 = pnand %p2017_p7, %p2011_p5 }
  0x34   : > { %2021 = shalt.err (!%p2018_p9)
}
  0x35   : > { %s3026_s7 = sld [smem:[#allocation36_spill]]  ;;  %s2390_s27 = sadd.s32 1, %s2234_s20  }
  0x36   : > { %3027 = sst [smem:[#allocation23_spill]] %s2390_s27  ;;  %s39_s12 = sadd.s32 1, %s2230_s19 }
  0x37   : > { %s36_s15 = ssub.s32 %s2234_s20, %s2390_s27  ;;  %p46_p13 = scmp.ne.s32.totalorder %s2230_s19, %s2226_s18 }
  0x38   : > { %p37_p0 = scmp.eq.s32.totalorder %s36_s15, 0  ;;  %p47_p5 = scmp.eq.s32.totalorder %s2234_s20, 0 }
  0x39   : > { %p2400_p10 = por %p296_p2, %p46_p13  ;;  %p1895_p3 = scmp.lt.s32.totalorder %s2234_s20, 2 }
  0x3a   : > { %s2406_s22 = scalar_select %p37_p0, %s2230_s19, %s39_s12  }
  0x3b   : > { %1873 = dma.hbm_to_vmem [thread:$0]  (!%p2361_p11), %s3026_s7, 256, %s354_s30, [#allocation12], %s2994_s13, %s2994_s13, %s2996_s14  }
  0x3c   : > { %s3028_s16 = scalar_select %p2400_p10, 1, 0 }
  0x3d   : > { %3029 = sst [smem:[#allocation24_spill]] %s2406_s22  ;;  %p48_p7 = por %p47_p5, %p46_p13 }
  0x3e   : > { %s2409_s26 = sand.u32 1, %s2230_s19   ;;  %s407_s30 = sand.u32 1, %s2234_s20  }
  0x3f   : > { %s1630_s29 = sshll.u32 %s2409_s26, 7  ;;  %p2413_p9 = pnand %p1895_p3, %p48_p7 }
  0x40   : > { %s1678_s15 = sshll.u32 %s2234_s20, 11  ;;  %s3031_s1 = sld [smem:[#allocation33_spill]] }
  0x41   : > { %s411_s12 = scalar_lea.vmem [#allocation5], %s1630_s29  ;;  %s2240_s19 = smov [#allocation10]  }
  0x42   : > { %s418_s22 = sshll.u32 %s411_s12, 4  ;;  %s2425_s27 = sshll.u32 %s2240_s19, 4  ;;  %s2423_s22 = int_to_ptr.vmem [resolvable:$true] %s418_s22  ;;  %s338_s27 = int_to_ptr.vmem [resolvable:$true] %s2425_s27 }
  0x43   : > { %s2427_s24 = scalar_lea.sflag [#allocation6], %s407_s30  ;;  %p2433_p13 = pneg %p2413_p9 }
  0x46   : > { %s2421_s7 = scalar_lea.hbm %s3031_s1, %s1678_s15  ;;  %s2027_s29 = scalar_lea.hbm %s3031_s1, 4096 }
  0x47   : > { %s2022_s17 = scalar_lea.hbm %s2421_s7, 2048  ;;  %p2028_p3 = scmp.lt.s32.totalorder %s2421_s7, %s3031_s1 }
  0x48   : > { %p2023_p2 = scmp.ne.s32.totalorder %s2421_s7, %s2022_s17  ;;  %p2029_p7 = scmp.lt.s32.totalorder %s2027_s29, %s2022_s17 }
  0x4a   : > { %p2025_p0 = pnand %p2433_p13, %p2023_p2  ;;  %p2030_p1 = por %p2029_p7, %p2028_p3 }
  0x4c   : > { %p2026_p5 = pneg %p2025_p0 }
  0x4e   : > { %p2031_p12 = pnand %p2030_p1, %p2026_p5 }
  0x50   : > { %2034 = shalt.err (!%p2031_p12)
}
  0x51   : > { %s2035_s30 = scalar_lea.vmem %s2423_s22, 2048  ;;  %s2241_s12 = smov [#allocation5]  }
  0x52   : > { %p2036_p6 = scmp.ne.s32.totalorder %s2423_s22, %s2035_s30  ;;  %s2040_s3 = sshll.u32 %s2241_s12, 4  ;;  %s2041_s3 = int_to_ptr.vmem [resolvable:$false] %s2040_s3 }
  0x53   : > { %s2042_s14 = scalar_lea.vmem %s2041_s3, 4096  ;;  %p2043_p10 = scmp.lt.s32.totalorder %s2423_s22, %s2041_s3 }
  0x54   : > { %p2038_p2 = pnand %p2036_p6, %p2433_p13  ;;  %p2044_p4 = scmp.lt.s32.totalorder %s2042_s14, %s2035_s30 }
  0x56   : > { %p2039_p0 = pneg %p2038_p2  ;;  %p2045_p8 = por %p2044_p4, %p2043_p10 }
  0x58   : > { %p2046_p11 = pnand %p2045_p8, %p2039_p0 }
  0x5a   : > { %2049 = shalt.err (!%p2046_p11)
}
  0x5b   : > { %s3033_s17 = smov 4   ;;  %s3034_s29 = smov 64  }
  0x5c   : > { %1883 = dma.hbm_to_vmem [thread:$0]  (!%p2413_p9), %s2421_s7, 2048, %s2423_s22, %s2427_s24, %s3034_s29, %s3034_s29, %s3033_s17  }
  0x5d   : > { %s2061_s15 = scalar_lea.vmem %s338_s27, 1024  ;;  %p3035_p6 = scmp.ne.s32.totalorder %s3024_s28, 0 }
  0x5e   : > { %p2062_p1 = scmp.ne.s32.totalorder %s338_s27, %s2061_s15  ;;  %p2069_p8 = scmp.lt.s32.totalorder %s338_s27, %s338_s27 }
  0x5f   : > { %p3036_p12 = pneg %p3035_p6  ;;  %p2070_p11 = scmp.lt.s32.totalorder %s2061_s15, %s2061_s15 }
  0x61   : > { %p2064_p5 = pnand %p2062_p1, %p3036_p12  ;;  %p2071_p10 = por %p2070_p11, %p2069_p8 }
  0x63   : > { %p2065_p4 = pneg %p2064_p5 }
  0x65   : > { %p2072_p3 = pnand %p2071_p10, %p2065_p4 }
  0x67   : > { %2075 = shalt.err (!%p2072_p3)
}
  0x68   : > { %s3037_s5 = sld [smem:[#allocation35_spill]]  ;;  %s2242_s7 = smov [#allocation13]  }
  0x69   : > { %s369_s22 = sshll.u32 %s2242_s7, 4  ;;  %s1627_s12 = sshll.u32 %s2409_s26, 4  ;;  %s370_s22 = int_to_ptr.vmem [resolvable:$true] %s369_s22 }
  0x6a   : > { %s2087_s3 = scalar_lea.vmem %s370_s22, 1024  ;;  %p3038_p2 = pmov %p3036_p12 }
  0x6b   : > { %p2088_p7 = scmp.ne.s32.totalorder %s370_s22, %s2087_s3  ;;  %p2095_p12 = scmp.lt.s32.totalorder %s370_s22, %s370_s22 }
  0x6c   : > { %p2096_p5 = scmp.lt.s32.totalorder %s2087_s3, %s2087_s3 }
  0x6d   : > { %p2090_p0 = pnand %p2088_p7, %p3038_p2 }
  0x6e   : > { %1870 = dma.hbm_to_vmem [thread:$0]  (!%p3035_p6), %s3037_s5, 1024, %s338_s27, [#allocation9], %s3034_s29, %s3034_s29, %s3033_s17  }
  0x6f   : > { %p2091_p1 = pneg %p2090_p0  ;;  %p2097_p4 = por %p2096_p5, %p2095_p12 }
  0x71   : > { %p2098_p8 = pnand %p2097_p4, %p2091_p1 }
  0x73   : > { %2101 = shalt.err (!%p2098_p8)
}
  0x74   : > { %s3039_s9 = sld [smem:[#allocation37_spill]]  ;;  %s1677_s15 = sshll.u32 %s2234_s20, 8 }
  0x75   : > { %s3040_s0 = sld [smem:[#allocation32_spill]]  ;;  %s390_s28 = scalar_lea.vmem [#allocation2], %s1627_s12 }
  0x76   : > { %s397_s3 = sshll.u32 %s390_s28, 4  ;;  %s1633_s1 = sshll.u32 %s2409_s26, 3  ;;  %s2489_s3 = int_to_ptr.vmem [resolvable:$true] %s397_s3 }
  0x77   : > { %s387_s27 = scalar_lea.sflag [#allocation3], %s2409_s26 }
  0x7a   : > { %1876 = dma.hbm_to_vmem [thread:$0]  (!%p3035_p6), %s3039_s9, 1024, %s370_s22, [#allocation12], %s3034_s29, %s3034_s29, %s3033_s17  }
  0x7b   : > { %s2487_s7 = scalar_lea.hbm %s3040_s0, %s1677_s15  ;;  %s2107_s19 = scalar_lea.hbm %s3040_s0, 512 }
  0x7c   : > { %s2102_s14 = scalar_lea.hbm %s2487_s7, 256  ;;  %p2108_p3 = scmp.lt.s32.totalorder %s2487_s7, %s3040_s0 }
  0x7d   : > { %p2103_p11 = scmp.ne.s32.totalorder %s2487_s7, %s2102_s14  ;;  %p2109_p7 = scmp.lt.s32.totalorder %s2107_s19, %s2102_s14 }
  0x7f   : > { %p2105_p10 = pnand %p2103_p11, %p2433_p13  ;;  %p2110_p2 = por %p2109_p7, %p2108_p3 }
  0x81   : > { %p2106_p6 = pneg %p2105_p10 }
  0x83   : > { %p2111_p0 = pnand %p2110_p2, %p2106_p6 }
  0x85   : > { %2114 = shalt.err (!%p2111_p0)
}
  0x86   : > { %s2115_s12 = scalar_lea.vmem %s2489_s3, 256  ;;  %s2243_s28 = smov [#allocation2]  }
  0x87   : > { %p2116_p1 = scmp.ne.s32.totalorder %s2489_s3, %s2115_s12  ;;  %s2120_s5 = sshll.u32 %s2243_s28, 4  ;;  %s2121_s5 = int_to_ptr.vmem [resolvable:$false] %s2120_s5 }
  0x88   : > { %s2122_s22 = scalar_lea.vmem %s2121_s5, 512  ;;  %p2123_p4 = scmp.lt.s32.totalorder %s2489_s3, %s2121_s5 }
  0x89   : > { %p2118_p12 = pnand %p2116_p1, %p2433_p13  ;;  %p2124_p8 = scmp.lt.s32.totalorder %s2122_s22, %s2115_s12 }
  0x8b   : > { %p2119_p5 = pneg %p2118_p12  ;;  %p2125_p11 = por %p2124_p8, %p2123_p4 }
  0x8d   : > { %p2126_p10 = pnand %p2125_p11, %p2119_p5 }
  0x8f   : > { %2129 = shalt.err (!%p2126_p10)
}
  0x90   : > { %s2244_s14 = smov 128   ;;  %s2245_s19 = smov 8  }
  0x91   : > { %1880 = dma.hbm_to_vmem [thread:$0]  (!%p2413_p9), %s2487_s7, 256, %s2489_s3, %s387_s27, %s2244_s14, %s2244_s14, %s2245_s19  }
  0x92   : > { %s1679_s15 = sshll.u32 %s2234_s20, 7  ;;  %s432_s5 = scalar_lea.vmem [#allocation7], %s1633_s1 }
  0x93   : > { %s2519_s12 = scalar_lea.hbm %s2984_s2, %s1679_s15  ;;  %s439_s22 = sshll.u32 %s432_s5, 4  ;;  %s440_s22 = int_to_ptr.vmem [resolvable:$true] %s439_s22 }
  0x94   : > { %s2130_s0 = scalar_lea.hbm %s2519_s12, 128  ;;  %s2135_s3 = scalar_lea.hbm %s2984_s2, 256 }
  0x95   : > { %p2131_p6 = scmp.ne.s32.totalorder %s2519_s12, %s2130_s0  ;;  %p2136_p2 = scmp.lt.s32.totalorder %s2519_s12, %s2984_s2 }
  0x96   : > { %p2137_p0 = scmp.lt.s32.totalorder %s2135_s3, %s2130_s0 }
  0x97   : > { %p2133_p3 = pnand %p2131_p6, %p2433_p13 }
  0x98   : > { %p2138_p1 = por %p2137_p0, %p2136_p2 }
  0x99   : > { %p2134_p7 = pneg %p2133_p3 }
  0x9b   : > { %p2139_p12 = pnand %p2138_p1, %p2134_p7 }
  0x9d   : > { %2142 = shalt.err (!%p2139_p12)
}
  0x9e   : > { %s2143_s1 = scalar_lea.vmem %s440_s22, 128  ;;  %s2246_s26 = smov [#allocation7]  }
  0x9f   : > { %p2144_p5 = scmp.ne.s32.totalorder %s440_s22, %s2143_s1  ;;  %s2148_s19 = sshll.u32 %s2246_s26, 4  ;;  %s2149_s19 = int_to_ptr.vmem [resolvable:$false] %s2148_s19 }
  0xa0   : > { %s2150_s15 = scalar_lea.vmem %s2149_s19, 256  ;;  %p2151_p11 = scmp.lt.s32.totalorder %s440_s22, %s2149_s19 }
  0xa1   : > { %p2146_p4 = pnand %p2144_p5, %p2433_p13  ;;  %p2152_p10 = scmp.lt.s32.totalorder %s2150_s15, %s2143_s1 }
  0xa3   : > { %p2147_p8 = pneg %p2146_p4  ;;  %p2153_p6 = por %p2152_p10, %p2151_p11 }
  0xa5   : > { %p2154_p3 = pnand %p2153_p6, %p2147_p8 }
  0xa7   : > { %2157 = shalt.err (!%p2154_p3)
}
  0xa8   : > { %1886 = dma.hbm_to_vmem [thread:$0]  (!%p2413_p9), %s2519_s12, 128, %s440_s22, %s2427_s24, %s3034_s29, %s3034_s29, %s3033_s17  }
  0xa9   : > { %p3041_p13 = scmp.ne.s32.totalorder %s3023_s25, 0 }
  0xab   : > { %451 = sbr.rel (%p3041_p13) target bundleno = 668 (0x29c), region = 64 }
  0xb0   : > { %s2546_s0 = sand.u32 1, %s2226_s18   ;;  %p3042_p7 = scmp.ne.s32.totalorder %s3020_s23, 0 }
  0xb1   : > { %s1637_s9 = sshll.u32 %s2546_s0, 4  ;;  %s454_s11 = scalar_lea.sflag [#allocation3], %s2546_s0 }
  0xb2   : > { %s2552_s13 = scalar_lea.vmem [#allocation2], %s1637_s9 }
  0xb3   : > { %2201 = dma.done.wait (%p3042_p7), %s454_s11, 256  }
  0xb4   : > { %2203 = vsyncadd (%p3042_p7), %s454_s11, 4294967040  ;;  %s462_s24 = sand.u32 1, %s2333_s21   ;;  %s1638_s25 = sshll.u32 %s2546_s0, 7 }
  0xb5   : > { %s463_s17 = scalar_lea.sflag [#allocation6], %s462_s24  ;;  %s2560_s29 = scalar_lea.vmem [#allocation5], %s1638_s25 }
  0xb6   : > { %2205 = dma.done.wait (%p3042_p7), %s463_s17, 2176  }
  0xb7   : > { %2207 = vsyncadd (%p3042_p7), %s463_s17, 4294965120  ;;  %s1639_s30 = sshll.u32 %s2546_s0, 3  ;;  %p3043_p9 = scmp.eq.s32.totalorder %s2333_s21, 0 }
  0xb8   : > { %s475_s28 = scalar_lea.vmem [#allocation7], %s1639_s30 }
  0xb9   : > { %2209 = dma.done.wait (%p3043_p9), [#allocation9], 1280   ;;  %p3044_p2 = pmov %p3043_p9 }
  0xbb   : > { %2211 = vsyncadd (%p3044_p2), [#allocation9], 4294966016  ;;  %p3045_p0 = pmov %p3044_p2 }
  0xbd   : > { %2213 = dma.done.wait (%p3045_p0), [#allocation12], 1280   ;;  %p3046_p1 = pmov %p3045_p0 }
  0xbe   : > { %v2247_v0 = vmov 0.0   ;;  %vm2248_vm0 = vmmov 0   ;;  %vm543_vm1 = vcmask 130048   ;;  %v2582_v1 = vld [vmem:[%s2552_s13] sm:$0xff]  ;;  %v1945_v3 = vld [vmem:[#allocation8 + $0x8] sm:$0xff]   ;;  %v1947_v5 = vld [vmem:[#allocation11 + $0x8] sm:$0xff]   ;;  %v933_v28 = vlaneseq }
  0xbf   : > { %2215 = vsyncadd (%p3046_p1), [#allocation12], 4294966016  ;;  %1784 = vmatprep.subr.bf16.mxu1 %v2247_v0  ;;  %1812 = vmatprep.subr.bf16.mxu0 %v2247_v0  ;;  %v544_v2 = vsel %vm543_vm1, %v2582_v1, 0.0  ;;  %v1946_v4 = vld [vmem:[#allocation8] sm:$0xff]   ;;  %v1948_v6 = vld [vmem:[%s475_s28] sm:$0xff]   ;;  %vm590_vm2 = vcmask 261120  }
  0xc0   : > { %1788 = vmatprep.mubr.msk.bf16.mxu1 %vm2248_vm0, %v2247_v0  ;;  %1816 = vmatprep.mubr.msk.bf16.mxu0 %vm2248_vm0, %v2247_v0  ;;  %v2587_v7 = vld [vmem:[%s2552_s13 + $0x8] sm:$0xff]  ;;  %v1949_v9 = vld [vmem:[#allocation11] sm:$0xff]   ;;  %v1951_v11 = vld [vmem:[#allocation10 + $0x30] sm:$0xff]   ;;  %v2611_v29 = vshrl.u32 %v933_v28, 7  ;;  %vm1414_vm5 = vcmask 1041409   ;;  %vm1417_vm6 = vcmask 1042434  }
  0xc1   : > { %545 = vadd.xlane.f32.xlu0 %v544_v2  ;;  %1785 = vmatpush3.bf16.msra.mxu1 %v1945_v3  ;;  %v547_v8 = vsel %vm543_vm1, %v2587_v7, 0.0  ;;  %v1950_v10 = vld [vmem:[#allocation10 + $0x38] sm:$0xff]   ;;  %v1952_v12 = vld [vmem:[#allocation13 + $0x38] sm:$0xff]   ;;  %v1954_v14 = vld [vmem:[#allocation13 + $0x30] sm:$0xff]   ;;  %vm1420_vm7 = vcmask 1043459   ;;  %vm1423_vm8 = vcmask 1044484  }
  0xc2   : > { %1786 = vmatprep.subr.bf16.mxu1 %v2247_v0  ;;  %1813 = vmatpush3.bf16.msra.mxu0 %v1947_v5  ;;  %v1953_v13 = vld [vmem:[#allocation10 + $0x28] sm:$0xff]   ;;  %v1955_v15 = vld [vmem:[#allocation10 + $0x20] sm:$0xff]   ;;  %v1956_v16 = vld [vmem:[#allocation13 + $0x28] sm:$0xff]   ;;  %v946_v31 = vsub.s32 1, %v2611_v29  ;;  %v935_v38 = vsub.s32 0, %v2611_v29  ;;  %v957_v40 = vsub.s32 2, %v2611_v29 }
  0xc3   : > { %1814 = vmatprep.subr.bf16.mxu0 %v2247_v0  ;;  %v1957_v17 = vld [vmem:[#allocation10 + $0x18] sm:$0xff]   ;;  %v1958_v18 = vld [vmem:[#allocation13 + $0x20] sm:$0xff]   ;;  %v1960_v20 = vld [vmem:[#allocation13 + $0x18] sm:$0xff]   ;;  %v968_v42 = vsub.s32 3, %v2611_v29  ;;  %v979_v48 = vsub.s32 4, %v2611_v29  ;;  %v990_v51 = vsub.s32 5, %v2611_v29 }
  0xc4   : > { %v1959_v19 = vld [vmem:[#allocation10 + $0x10] sm:$0xff]   ;;  %v1961_v21 = vld [vmem:[#allocation10 + $0x8] sm:$0xff]   ;;  %v1962_v22 = vld [vmem:[#allocation13 + $0x10] sm:$0xff]   ;;  %v1001_v54 = vsub.s32 6, %v2611_v29  ;;  %v1012_v57 = vsub.s32 7, %v2611_v29  ;;  %vm1426_vm9 = vcmask 1045509  }
  0xc5   : > { %548 = vadd.xlane.f32.xlu0 %v547_v8  ;;  %1787 = vmatpush3.bf16.msra.mxu1 %v1946_v4  ;;  %v1963_v23 = vld [vmem:[#allocation10] sm:$0xff]   ;;  %v1964_v24 = vld [vmem:[#allocation13 + $0x8] sm:$0xff]   ;;  %v1965_v25 = vld [vmem:[#allocation13] sm:$0xff]   ;;  %vm1429_vm10 = vcmask 1046534   ;;  %vm1432_vm11 = vcmask 1047559   ;;  %s1680_s1 = sshll.u32 %s2333_s21, 8 }
  0xc6   : > { %1792 = vmatprep.subr.bf16.mxu1 %v2247_v0  ;;  %1815 = vmatpush3.bf16.msra.mxu0 %v1949_v9  ;;  %v1645_v58 = vld [vmem:[%s2986_s4] ss:$0 sm:$0xff]  ;;  %s539_s26 = scalar_lea.vmem [#allocation14], %s1637_s9  ;;  %s3061_s9 = sld [smem:[#allocation38_spill]] }
  0xc7   : > { %1820 = vmatprep.subr.bf16.mxu0 %v2247_v0  ;;  %v1659_v60 = vld [vmem:[%s2990_s8] ss:$0 sm:$0xff]  ;;  %s1466_s19 = sshll.u32 %s539_s26, 4  ;;  %s1453_s13 = scalar_lea.sflag [#allocation4], %s2546_s0  ;;  %s2937_s19 = int_to_ptr.vmem [resolvable:$true] %s1466_s19 }
  0xc8   : > { %1789 = vmatmul.mubr.msk.bf16.vlgmr.msra.gmra.mxu1 %vm590_vm2, %v1948_v6  ;;  %s2158_s24 = scalar_lea.vmem %s2937_s19, 256  ;;  %p3062_p5 = scmp.ne.s32.totalorder %s3028_s16, 0 }
  0xc9   : > { %1808 = vmatprep.mubr.msk.bf16.mxu1 %vm2248_vm0, %v2247_v0  ;;  %1817 = vmatmul.mubr.msk.bf16.vlgmr.msra.gmra.mxu0 %vm590_vm2, %v1948_v6  ;;  %p2159_p12 = scmp.ne.s32.totalorder %s2937_s19, %s2158_s24  ;;  %s2249_s25 = smov [#allocation14]  }
  0xca   : > { %1836 = vmatprep.mubr.msk.bf16.mxu0 %vm2248_vm0, %v2247_v0  ;;  %1793 = vmatpush3.bf16.msra.mxu1 %v1950_v10  ;;  %s2162_s17 = sshll.u32 %s2249_s25, 4  ;;  %s2163_s17 = int_to_ptr.vmem [resolvable:$false] %s2162_s17 }
  0xcb   : > { %1794 = vmatprep.subr.bf16.mxu1 %v2247_v0  ;;  %1821 = vmatpush3.bf16.msra.mxu0 %v1952_v12  ;;  %p2160_p4 = pnand %p2159_p12, %p3062_p5  ;;  %p2165_p11 = scmp.lt.s32.totalorder %s2937_s19, %s2163_s17 }
  0xcc   : > { %1822 = vmatprep.subr.bf16.mxu0 %v2247_v0  ;;  %s2935_s11 = scalar_lea.hbm %s3061_s9, %s1680_s1 }
  0xcd   : > { %p2161_p8 = pneg %p2160_p4 }
  0xce   : > { %1795 = vmatpush3.bf16.msra.mxu1 %v1951_v11 }
  0xcf   : > { %1796 = vmatprep.subr.bf16.mxu1 %v2247_v0  ;;  %1823 = vmatpush3.bf16.msra.mxu0 %v1954_v14 }
  0xd0   : > { %1824 = vmatprep.subr.bf16.mxu0 %v2247_v0 }
  0xd2   : > { %1797 = vmatpush3.bf16.msra.mxu1 %v1953_v13 }
  0xd3   : > { %1798 = vmatprep.subr.bf16.mxu1 %v2247_v0  ;;  %1825 = vmatpush3.bf16.msra.mxu0 %v1956_v16 }
  0xd4   : > { %1826 = vmatprep.subr.bf16.mxu0 %v2247_v0 }
  0xd6   : > { %1799 = vmatpush3.bf16.msra.mxu1 %v1955_v15 }
  0xd7   : > { %1800 = vmatprep.subr.bf16.mxu1 %v2247_v0  ;;  %1827 = vmatpush3.bf16.msra.mxu0 %v1958_v18 }
  0xd8   : > { %1828 = vmatprep.subr.bf16.mxu0 %v2247_v0 }
  0xda   : > { %1801 = vmatpush3.bf16.msra.mxu1 %v1957_v17 }
  0xdb   : > { %1802 = vmatprep.subr.bf16.mxu1 %v2247_v0  ;;  %1829 = vmatpush3.bf16.msra.mxu0 %v1960_v20 }
  0xdc   : > { %1830 = vmatprep.subr.bf16.mxu0 %v2247_v0 }
  0xde   : > { %1803 = vmatpush3.bf16.msra.mxu1 %v1959_v19 }
  0xdf   : > { %1804 = vmatprep.subr.bf16.mxu1 %v2247_v0  ;;  %1831 = vmatpush3.bf16.msra.mxu0 %v1962_v22 }
  0xe0   : > { %1832 = vmatprep.subr.bf16.mxu0 %v2247_v0 }
  0xe2   : > { %1805 = vmatpush3.bf16.msra.mxu1 %v1961_v21 }
  0xe3   : > { %1806 = vmatprep.subr.bf16.mxu1 %v2247_v0  ;;  %1833 = vmatpush3.bf16.msra.mxu0 %v1964_v24 }
  0xe4   : > { %1834 = vmatprep.subr.bf16.mxu0 %v2247_v0 }
  0xe6   : > { %1807 = vmatpush3.bf16.msra.mxu1 %v1963_v23 }
  0xe7   : > { %1835 = vmatpush3.bf16.msra.mxu0 %v1965_v25 }
 0x14a   : > { %v546_v26 = vpop.xlane.xlu0 %545 }
 0x14b   : > { %1966 = vrcp.f32 %v546_v26  ;;  %vm550_vm3 = vcmp.gt.f32.partialorder %v546_v26, 0.0 }
 0x14e   : > { %v549_v27 = vpop.xlane.xlu0 %548 }
 0x14f   : > { %1968 = vrcp.f32 %v549_v27  ;;  %vm551_vm4 = vcmp.gt.f32.partialorder %v549_v27, 0.0 }
 0x158   : > { %v1967_v30 = vpop.eup %1966 }
 0x159   : > { %v556_v32 = vsel %vm550_vm3, %v1967_v30, 0.0 }
 0x15a   : > { %v558_v33 = vmul.f32 %v556_v32, %v2582_v1 }
 0x15c   : > { %v1969_v34 = vpop.eup %1968  ;;  %v947_v35 = vrot.slane %v558_v33, %v946_v31  ;;  %v936_v41 = vrot.slane %v558_v33, %v935_v38  ;;  %v958_v43 = vrot.slane %v558_v33, %v957_v40  ;;  %v969_v44 = vrot.slane %v558_v33, %v968_v42 }
 0x15d   : > { %v557_v36 = vsel %vm551_vm4, %v1969_v34, 0.0  ;;  %v980_v49 = vrot.slane %v558_v33, %v979_v48  ;;  %v991_v52 = vrot.slane %v558_v33, %v990_v51  ;;  %v1002_v55 = vrot.slane %v558_v33, %v1001_v54 }
 0x15e   : > { %v559_v37 = vmul.f32 %v557_v36, %v2587_v7  ;;  %949 = vbcast.lane.b32.xlu1 %v947_v35, 256  ;;  %v1013_v61 = vrot.slane %v558_v33, %v1012_v57 }
 0x160   : > { %v1035_v39 = vrot.slane %v559_v37, %v946_v31  ;;  %v1024_v45 = vrot.slane %v559_v37, %v935_v38  ;;  %v1046_v46 = vrot.slane %v559_v37, %v957_v40  ;;  %v1057_v47 = vrot.slane %v559_v37, %v968_v42  ;;  %v1745_v42 = vld [vmem:[%s2560_s29 + $0x8] sm:$0xff]  }
 0x161   : > { %v1068_v50 = vrot.slane %v559_v37, %v979_v48  ;;  %v1079_v53 = vrot.slane %v559_v37, %v990_v51  ;;  %v1090_v56 = vrot.slane %v559_v37, %v1001_v54  ;;  %v1101_v5 = vrot.slane %v559_v37, %v1012_v57  ;;  %v2690_v48 = vld [vmem:[%s2560_s29 + $0x40] sm:$0xff]  }
 0x162   : > { %953 = vbcast.lane.b32.xlu1 %v947_v35, 264  ;;  %1037 = vbcast.lane.b32.xlu0 %v1035_v39, 256  ;;  %v2696_v54 = vld [vmem:[%s2560_s29 + $0x20] sm:$0xff]  }
 0x166   : > { %1041 = vbcast.lane.b32.xlu1 %v1035_v39, 264  ;;  %942 = vbcast.lane.b32.xlu0 %v936_v41, 264 }
 0x16a   : > { %960 = vbcast.lane.b32.xlu1 %v958_v43, 256  ;;  %975 = vbcast.lane.b32.xlu0 %v969_v44, 264 }
 0x16e   : > { %964 = vbcast.lane.b32.xlu1 %v958_v43, 264  ;;  %1030 = vbcast.lane.b32.xlu0 %v1024_v45, 264  ;;  %v1753_v43 = vld [vmem:[%s2560_s29 + $0x48] sm:$0xff]  }
 0x16f   : > { %v1720_v51 = vunpack.c.h.bf16 %v1753_v43 }
 0x172   : > { %1048 = vbcast.lane.b32.xlu1 %v1046_v46, 256  ;;  %1063 = vbcast.lane.b32.xlu0 %v1057_v47, 264 }
 0x176   : > { %1052 = vbcast.lane.b32.xlu1 %v1046_v46, 264  ;;  %986 = vbcast.lane.b32.xlu0 %v980_v49, 264  ;;  %v1754_v46 = vld [vmem:[%s2560_s29 + $0x50] sm:$0xff]  }
 0x17a   : > { %938 = vbcast.lane.b32.xlu1 %v936_v41, 256  ;;  %1074 = vbcast.lane.b32.xlu0 %v1068_v50, 264 }
 0x17e   : > { %971 = vbcast.lane.b32.xlu1 %v969_v44, 256  ;;  %997 = vbcast.lane.b32.xlu0 %v991_v52, 264  ;;  %v1746_v44 = vld [vmem:[%s2560_s29 + $0x10] sm:$0xff]  }
 0x182   : > { %1026 = vbcast.lane.b32.xlu1 %v1024_v45, 256  ;;  %1085 = vbcast.lane.b32.xlu0 %v1079_v53, 264  ;;  %v2685_v45 = vld [vmem:[%s2560_s29] sm:$0xff]  }
 0x183   : > { %v1684_v57 = vunpack.c.h.bf16 %v2685_v45 }
 0x186   : > { %1059 = vbcast.lane.b32.xlu1 %v1057_v47, 256  ;;  %1008 = vbcast.lane.b32.xlu0 %v1002_v55, 264  ;;  %v1747_v47 = vld [vmem:[%s2560_s29 + $0x18] sm:$0xff]  }
 0x188   : > { %v628_v59 = vpop.f32.mrf.mxu1 }
 0x189   : > { %v809_v63 = vpop.f32.mrf.mxu0  ;;  %v629_v0 = vadd.f32 %v1645_v58, %v628_v59  ;;  %v2700_v59 = vld [vmem:[%s2560_s29 + $0x60] sm:$0xff]  }
 0x18a   : > { %982 = vbcast.lane.b32.xlu1 %v980_v49, 256  ;;  %1096 = vbcast.lane.b32.xlu0 %v1090_v56, 264  ;;  %v1790_v62 = vpop.f32.mrf.mxu1  ;;  %v810_v1 = vadd.f32 %v1659_v60, %v809_v63  ;;  %v1687_v49 = vunpack.c.l.bf16 %v1745_v42  ;;  %v1716_v63 = vunpack.c.h.bf16 %v2690_v48 }
 0x18b   : > { %v1818_v3 = vpop.f32.mrf.mxu0  ;;  %v635_v8 = vmax.f32 %v629_v0, 0.0  ;;  %v1724_v62 = vunpack.c.h.bf16 %v1754_v46  ;;  %v1683_v0 = vunpack.c.l.bf16 %v2685_v45 }
 0x18c   : > { %v631_v2 = vpop.f32.mrf.mxu1  ;;  %v816_v10 = vmax.f32 %v810_v1, 0.0  ;;  %v2708_v1 = vld [vmem:[%s2560_s29 + $0x68] sm:$0xff]  }
 0x18d   : > { %v632_v4 = vadd.f32 %v1645_v58, %v631_v2  ;;  %v812_v7 = vpop.f32.mrf.mxu0  ;;  %v1723_v58 = vunpack.c.l.bf16 %v1754_v46  ;;  %v2711_v2 = vld [vmem:[%s2560_s29 + $0x30] sm:$0xff]  }
 0x18e   : > { %1070 = vbcast.lane.b32.xlu1 %v1068_v50, 256  ;;  %1019 = vbcast.lane.b32.xlu0 %v1013_v61, 264  ;;  %v1791_v6 = vpop.f32.mrf.mxu1  ;;  %v813_v11 = vadd.f32 %v1659_v60, %v812_v7  ;;  %v1688_v50 = vunpack.c.h.bf16 %v1745_v42  ;;  %v2703_v60 = vld [vmem:[%s2560_s29 + $0x28] sm:$0xff]   ;;  %v1700_v7 = vunpack.c.h.bf16 %v2696_v54  ;;  %v1736_v42 = vunpack.c.h.bf16 %v2708_v1 }
 0x18f   : > { %v636_v9 = vmax.f32 %v632_v4, 0.0  ;;  %v1819_v12 = vpop.f32.mrf.mxu0  ;;  %v1695_v6 = vunpack.c.l.bf16 %v1747_v47  ;;  %v1703_v45 = vunpack.c.l.bf16 %v2703_v60 }
 0x190   : > { %v817_v14 = vmax.f32 %v813_v11, 0.0  ;;  %v1732_v11 = vunpack.c.h.bf16 %v2700_v59 }
 0x191   : > { %v637_v13 = vpack.c.bf16 %v636_v9, %v635_v8  ;;  %v1715_v8 = vunpack.c.l.bf16 %v2690_v48  ;;  %v2719_v9 = vld [vmem:[%s2560_s29 + $0x70] sm:$0xff]  }
 0x192   : > { %993 = vbcast.lane.b32.xlu1 %v991_v52, 256  ;;  %1107 = vbcast.lane.b32.xlu0 %v1101_v5, 264  ;;  %v818_v15 = vpack.c.bf16 %v817_v14, %v816_v10  ;;  %v1691_v52 = vunpack.c.l.bf16 %v1746_v44  ;;  %v2722_v10 = vld [vmem:[%s2560_s29 + $0x38] sm:$0xff]   ;;  %v1699_v14 = vunpack.c.l.bf16 %v2696_v54  ;;  %v1740_v46 = vunpack.c.h.bf16 %v2719_v9 }
 0x193   : > { %1809 = vmatmul.mubr.bf16.vlgmr.msra.gmra.mxu1 %v637_v13  ;;  %v1704_v13 = vunpack.c.h.bf16 %v2703_v60  ;;  %v1712_v48 = vunpack.c.h.bf16 %v2722_v10 }
 0x194   : > { %1837 = vmatmul.mubr.bf16.vlgmr.msra.gmra.mxu0 %v818_v15  ;;  %v1759_v15 = vld [vmem:[%s2560_s29 + $0x78] sm:$0xff]  }
 0x195   : > { %v1744_v54 = vunpack.c.h.bf16 %v1759_v15 }
 0x196   : > { %1081 = vbcast.lane.b32.xlu1 %v1079_v53, 256  ;;  %v2693_v53 = vld [vmem:[%s2560_s29 + $0x58] sm:$0xff]   ;;  %s2164_s29 = scalar_lea.vmem %s2163_s17, 512 }
 0x197   : > { %v1727_v12 = vunpack.c.l.bf16 %v2693_v53  ;;  %p2166_p10 = scmp.lt.s32.totalorder %s2164_s29, %s2158_s24 }
 0x199   : > { %p2167_p6 = por %p2166_p10, %p2165_p11 }
 0x19a   : > { %1004 = vbcast.lane.b32.xlu1 %v1002_v55, 256  ;;  %v1719_v55 = vunpack.c.l.bf16 %v1753_v43  ;;  %v1731_v43 = vunpack.c.l.bf16 %v2700_v59 }
 0x19b   : > { %p2168_p3 = pnand %p2167_p6, %p2161_p8 }
 0x19e   : > { %1092 = vbcast.lane.b32.xlu1 %v1090_v56, 256  ;;  %v1692_v56 = vunpack.c.h.bf16 %v1746_v44  ;;  %v1708_v44 = vunpack.c.h.bf16 %v2711_v2 }
 0x1a2   : > { %1015 = vbcast.lane.b32.xlu1 %v1013_v61, 256  ;;  %v1696_v61 = vunpack.c.h.bf16 %v1747_v47  ;;  %v1735_v47 = vunpack.c.l.bf16 %v2708_v1 }
 0x1a6   : > { %1103 = vbcast.lane.b32.xlu1 %v1101_v5, 256  ;;  %v1728_v5 = vunpack.c.h.bf16 %v2693_v53  ;;  %v1707_v53 = vunpack.c.l.bf16 %v2711_v2 }
 0x1d0   : > { %v2629_v16 = vpop.permute.xlu1 %949 }
 0x1d1   : > { %v1175_v59 = vmul.f32 %v1687_v49, %v2629_v16  ;;  %v1650_v16 = vld [vmem:[%s2988_s6] ss:$0 sm:$0xff] }
 0x1d4   : > { %v2631_v17 = vpop.permute.xlu1 %953  ;;  %v2641_v22 = vpop.permute.xlu0 %1037 }
 0x1d8   : > { %v2633_v18 = vpop.permute.xlu1 %1041  ;;  %v2645_v24 = vpop.permute.xlu0 %942 }
 0x1d9   : > { %v2742_v60 = vmul.f32 %v1720_v51, %v2633_v18 }
 0x1dc   : > { %v2635_v19 = vpop.permute.xlu1 %960  ;;  %v2649_v26 = vpop.permute.xlu0 %975 }
 0x1e0   : > { %v2637_v20 = vpop.permute.xlu1 %964  ;;  %v2653_v28 = vpop.permute.xlu0 %1030 }
 0x1e1   : > { %v2747_v2 = vmul.f32 %v1692_v56, %v2637_v20 }
 0x1e4   : > { %v2639_v21 = vpop.permute.xlu1 %1048  ;;  %v2657_v30 = vpop.permute.xlu0 %1063 }
 0x1e5   : > { %v2764_v20 = vmul.f32 %v1728_v5, %v2657_v30 }
 0x1e8   : > { %v2643_v23 = vpop.permute.xlu1 %1052  ;;  %v2661_v32 = vpop.permute.xlu0 %986 }
 0x1e9   : > { %v2760_v18 = vmul.f32 %v1724_v62, %v2643_v23 }
 0x1ec   : > { %v2647_v25 = vpop.permute.xlu1 %938  ;;  %v2665_v34 = vpop.permute.xlu0 %1074 }
 0x1ed   : > { %v2770_v49 = vmul.f32 %v1732_v11, %v2665_v34 }
 0x1f0   : > { %v2651_v27 = vpop.permute.xlu1 %971  ;;  %v2669_v36 = vpop.permute.xlu0 %997 }
 0x1f4   : > { %v2655_v29 = vpop.permute.xlu1 %1026  ;;  %v2673_v38 = vpop.permute.xlu0 %1085 }
 0x1f5   : > { %v1189_v23 = vmul.f32 %v1715_v8, %v2655_v29  ;;  %v2778_v30 = vmul.f32 %v1736_v42, %v2673_v38 }
 0x1f8   : > { %v2659_v31 = vpop.permute.xlu1 %1059  ;;  %v2677_v40 = vpop.permute.xlu0 %1008 }
 0x1f9   : > { %3051 = vst [vmem:[#allocation29_spill] sm:$0xff] %v2677_v40 }
 0x1fc   : > { %v2663_v33 = vpop.permute.xlu1 %982  ;;  %v1097_v3 = vpop.permute.xlu0 %1096 }
 0x1fd   : > { %3047 = vst [vmem:[#allocation25_spill] sm:$0xff] %v2663_v33  ;;  %v1177_v33 = vmul.f32 %v1691_v52, %v2635_v19  ;;  %v1190_v19 = vmul.f32 %v1716_v63, %v2653_v28  ;;  %v1184_v28 = vmul.f32 %v1704_v13, %v2669_v36  ;;  %v2785_v56 = vmul.f32 %v1740_v46, %v1097_v3 }
 0x200   : > { %v2667_v35 = vpop.permute.xlu1 %1070  ;;  %v1020_v1 = vpop.permute.xlu0 %1019  ;;  %v3055_v52 = vld [vmem:[#allocation29_spill] sm:$0xff] }
 0x201   : > { %3048 = vst [vmem:[#allocation26_spill] sm:$0xff] %v2667_v35  ;;  %v1191_v35 = vmul.f32 %v1719_v55, %v2641_v22  ;;  %v1173_v22 = vmul.f32 %v1683_v0, %v2647_v25  ;;  %v1186_v55 = vmul.f32 %v1708_v44, %v3055_v52  ;;  %v1188_v36 = vmul.f32 %v1712_v48, %v1020_v1 }
 0x204   : > { %v2671_v37 = vpop.permute.xlu1 %993  ;;  %v1108_v25 = vpop.permute.xlu0 %1107 }
 0x205   : > { %3049 = vst [vmem:[#allocation27_spill] sm:$0xff] %v2671_v37  ;;  %v1176_v37 = vmul.f32 %v1688_v50, %v2631_v17  ;;  %v2757_v17 = vmul.f32 %v1723_v58, %v2639_v21  ;;  %v1663_v21 = vld [vmem:[%s2992_s10] ss:$0 sm:$0xff]  ;;  %v2797_v11 = vmul.f32 %v1744_v54, %v1108_v25 }
 0x208   : > { %v2675_v39 = vpop.permute.xlu1 %1081 }
 0x209   : > { %3050 = vst [vmem:[#allocation28_spill] sm:$0xff] %v2675_v39  ;;  %v1743_v39 = vunpack.c.l.bf16 %v1759_v15 }
 0x20c   : > { %v2679_v41 = vpop.permute.xlu1 %1004  ;;  %v3057_v0 = vld [vmem:[#allocation27_spill] sm:$0xff] }
 0x20d   : > { %3052 = vst [vmem:[#allocation30_spill] sm:$0xff] %v2679_v41  ;;  %v1711_v41 = vunpack.c.l.bf16 %v2722_v10  ;;  %v2751_v10 = vmul.f32 %v1696_v61, %v2649_v26  ;;  %v1182_v26 = vmul.f32 %v1700_v7, %v2661_v32  ;;  %v3054_v32 = vld [vmem:[#allocation25_spill] sm:$0xff]  ;;  %v3056_v61 = vld [vmem:[#allocation26_spill] sm:$0xff]  ;;  %v1183_v5 = vmul.f32 %v1703_v45, %v3057_v0 }
 0x20e   : > { %v1181_v34 = vmul.f32 %v1699_v14, %v3054_v32  ;;  %v2788_v29 = vmul.f32 %v1731_v43, %v3056_v61 }
 0x210   : > { %v2713_v4 = vpop.permute.xlu1 %1092 }
 0x211   : > { %3053 = vst [vmem:[#allocation31_spill] sm:$0xff] %v2713_v4  ;;  %v1739_v4 = vunpack.c.l.bf16 %v2719_v9  ;;  %v1174_v9 = vmul.f32 %v1684_v57, %v2645_v24  ;;  %v1179_v24 = vmul.f32 %v1695_v6, %v2651_v27  ;;  %v2781_v27 = vmul.f32 %v1727_v12, %v2659_v31  ;;  %v3058_v31 = vld [vmem:[#allocation28_spill] sm:$0xff] }
 0x212   : > { %v2794_v6 = vmul.f32 %v1735_v47, %v3058_v31 }
 0x214   : > { %v1016_v40 = vpop.permute.xlu1 %1015  ;;  %v3059_v7 = vld [vmem:[#allocation30_spill] sm:$0xff] }
 0x215   : > { %v1185_v8 = vmul.f32 %v1707_v53, %v3059_v7  ;;  %v1187_v15 = vmul.f32 %v1711_v41, %v1016_v40 }
 0x218   : > { %v1104_v62 = vpop.permute.xlu1 %1103  ;;  %v3060_v13 = vld [vmem:[#allocation31_spill] sm:$0xff] }
 0x219   : > { %v2800_v14 = vmul.f32 %v1739_v4, %v3060_v13  ;;  %v2804_v44 = vmul.f32 %v1743_v39, %v1104_v62 }
 0x253   : > { %v743_v50 = vpop.f32.mrf.mxu1 }
 0x254   : > { %v744_v51 = vadd.f32 %v1650_v16, %v743_v50  ;;  %v924_v58 = vpop.f32.mrf.mxu0 }
 0x255   : > { %v1810_v57 = vpop.f32.mrf.mxu1  ;;  %v925_v63 = vadd.f32 %v1663_v21, %v924_v58 }
 0x256   : > { %v2790_v38 = vmax.f32 %v744_v51, 0.0  ;;  %v1838_v12 = vpop.f32.mrf.mxu0 }
 0x257   : > { %v746_v3 = vpop.f32.mrf.mxu1  ;;  %v2802_v43 = vmax.f32 %v925_v63, 0.0 }
 0x258   : > { %v747_v42 = vadd.f32 %v1650_v16, %v746_v3  ;;  %v1205_v45 = vmul.f32 %v1173_v22, %v2790_v38  ;;  %v1207_v46 = vmul.f32 %v1175_v59, %v2790_v38  ;;  %v927_v48 = vpop.f32.mrf.mxu0  ;;  %v1221_v53 = vmul.f32 %v1189_v23, %v2790_v38 }
 0x259   : > { %v1811_v47 = vpop.f32.mrf.mxu1  ;;  %v1223_v1 = vmul.f32 %v1191_v35, %v2790_v38  ;;  %v1209_v4 = vmul.f32 %v1177_v33, %v2790_v38  ;;  %v1211_v40 = vmul.f32 %v1179_v24, %v2790_v38  ;;  %v1351_v41 = vrot.slane %v2802_v43, 1 }
 0x25a   : > { %v2809_v54 = vmax.f32 %v747_v42, 0.0  ;;  %v1352_v39 = vrot.slane %v2802_v43, 2  ;;  %v1353_v16 = vrot.slane %v2802_v43, 3  ;;  %v928_v22 = vadd.f32 %v1663_v21, %v927_v48  ;;  %v1839_v59 = vpop.f32.mrf.mxu0 }
 0x25b   : > { %v1213_v24 = vmul.f32 %v1181_v34, %v2790_v38  ;;  %v1215_v51 = vmul.f32 %v1183_v5, %v2790_v38  ;;  %v2827_v32 = vmul.f32 %v1185_v8, %v2790_v38  ;;  %v1225_v13 = vmul.f32 %v2757_v17, %v2790_v38 }
 0x25c   : > { %v1206_v50 = vmul.f32 %v1174_v9, %v2809_v54  ;;  %v1208_v23 = vmul.f32 %v1176_v37, %v2809_v54  ;;  %v1222_v25 = vmul.f32 %v1190_v19, %v2809_v54  ;;  %v1224_v35 = vmul.f32 %v2742_v60, %v2809_v54 }
 0x25d   : > { %v2822_v33 = vmax.f32 %v928_v22, 0.0  ;;  %v1210_v19 = vmul.f32 %v2747_v2, %v2809_v54  ;;  %v1212_v60 = vmul.f32 %v2751_v10, %v2809_v54  ;;  %v1214_v58 = vmul.f32 %v1182_v26, %v2809_v54 }
 0x25e   : > { %v1237_v21 = vadd.f32 %v1206_v50, %v1205_v45  ;;  %v1244_v52 = vadd.f32 %v1208_v23, %v1207_v46  ;;  %v1293_v57 = vadd.f32 %v1222_v25, %v1221_v53  ;;  %v1300_v9 = vadd.f32 %v1224_v35, %v1223_v1 }
 0x25f   : > { %v1358_v37 = vrot.slane %v2822_v33, 1  ;;  %v1359_v0 = vrot.slane %v2822_v33, 2  ;;  %v1360_v5 = vrot.slane %v2822_v33, 3  ;;  %v1216_v31 = vmul.f32 %v1184_v28, %v2809_v54 }
 0x260   : > { %v1238_v34 = vrot.slane %v1237_v21, 4  ;;  %v1245_v61 = vrot.slane %v1244_v52, 4  ;;  %v1294_v62 = vrot.slane %v1293_v57, 4  ;;  %v1301_v63 = vrot.slane %v1300_v9, 4 }
 0x261   : > { %v1218_v7 = vmul.f32 %v1186_v55, %v2809_v54  ;;  %v1219_v10 = vmul.f32 %v1187_v15, %v2790_v38  ;;  %v1220_v26 = vmul.f32 %v1188_v36, %v2809_v54  ;;  %v1226_v42 = vmul.f32 %v2760_v18, %v2809_v54 }
 0x262   : > { %v1239_v8 = vadd.f32 %v1238_v34, %v1237_v21  ;;  %v1246_v3 = vadd.f32 %v1245_v61, %v1244_v52  ;;  %v1295_v2 = vadd.f32 %v1294_v62, %v1293_v57  ;;  %v1302_v12 = vadd.f32 %v1301_v63, %v1300_v9 }
 0x263   : > { %v1227_v55 = vmul.f32 %v2781_v27, %v2790_v38  ;;  %v1228_v48 = vmul.f32 %v2764_v20, %v2809_v54  ;;  %v2851_v15 = vmul.f32 %v2788_v29, %v2790_v38  ;;  %v2855_v17 = vmul.f32 %v2770_v49, %v2809_v54 }
 0x264   : > { %v1240_v45 = vrot.slane %v1239_v8, 2  ;;  %v1247_v46 = vrot.slane %v1246_v3, 2  ;;  %v1296_v47 = vrot.slane %v1295_v2, 2  ;;  %v1303_v28 = vrot.slane %v1302_v12, 2 }
 0x265   : > { %v2859_v22 = vmul.f32 %v2794_v6, %v2790_v38  ;;  %v2863_v27 = vmul.f32 %v2778_v30, %v2809_v54  ;;  %v2867_v20 = vmul.f32 %v2800_v14, %v2790_v38  ;;  %v1251_v29 = vadd.f32 %v1210_v19, %v1209_v4 }
 0x266   : > { %v1241_v36 = vadd.f32 %v1240_v45, %v1239_v8  ;;  %v1248_v18 = vadd.f32 %v1247_v46, %v1246_v3  ;;  %v1297_v53 = vadd.f32 %v1296_v47, %v1295_v2  ;;  %v1304_v1 = vadd.f32 %v1303_v28, %v1302_v12 }
 0x267   : > { %v1252_v25 = vrot.slane %v1251_v29, 4  ;;  %v1258_v35 = vadd.f32 %v1212_v60, %v1211_v40  ;;  %v1265_v21 = vadd.f32 %v1214_v58, %v1213_v24  ;;  %v1272_v52 = vadd.f32 %v1216_v31, %v1215_v51 }
 0x268   : > { %v1242_v59 = vrot.slane %v1241_v36, 1  ;;  %v1249_v49 = vrot.slane %v1248_v18, 1  ;;  %v1298_v50 = vrot.slane %v1297_v53, 1  ;;  %v1305_v23 = vrot.slane %v1304_v1, 1 }
 0x269   : > { %v1234_v30 = vmul.f32 %v2785_v56, %v2809_v54  ;;  %v1253_v34 = vadd.f32 %v1252_v25, %v1251_v29  ;;  %v1259_v61 = vrot.slane %v1258_v35, 4  ;;  %v1266_v62 = vrot.slane %v1265_v21, 4 }
 0x26a   : > { %v1243_v57 = vadd.f32 %v1242_v59, %v1241_v36  ;;  %v1250_v6 = vadd.f32 %v1249_v49, %v1248_v18  ;;  %v1306_v9 = vadd.f32 %v1305_v23, %v1304_v1  ;;  %v1273_v14 = vrot.slane %v1272_v52, 4 }
 0x26b   : > { %v1299_v19 = vadd.f32 %v1298_v50, %v1297_v53  ;;  %v1235_v63 = vmul.f32 %v2804_v44, %v2790_v38  ;;  %v1236_v40 = vmul.f32 %v2797_v11, %v2809_v54  ;;  %v1254_v24 = vrot.slane %v1253_v34, 2 }
 0x26c   : > { %v2872_v4 = vadd.f32 %v1243_v57, %v2802_v43  ;;  %v1260_v51 = vadd.f32 %v1259_v61, %v1258_v35  ;;  %v1267_v60 = vadd.f32 %v1266_v62, %v1265_v21  ;;  %v1274_v58 = vadd.f32 %v1273_v14, %v1272_v52 }
 0x26d   : > { %v2880_v56 = vadd.f32 %v1351_v41, %v1250_v6  ;;  %v2882_v31 = vadd.f32 %v1358_v37, %v1306_v9  ;;  %v1279_v8 = vadd.f32 %v1218_v7, %v2827_v32  ;;  %v1286_v3 = vadd.f32 %v1220_v26, %v1219_v10 }
 0x26e   : > { %v1255_v2 = vadd.f32 %v1254_v24, %v1253_v34  ;;  %v1261_v12 = vrot.slane %v1260_v51, 2  ;;  %v1268_v45 = vrot.slane %v1267_v60, 2  ;;  %v1275_v38 = vrot.slane %v1274_v58, 2 }
 0x26f   : > { %v1280_v44 = vrot.slane %v1279_v8, 4  ;;  %v1287_v46 = vrot.slane %v1286_v3, 4  ;;  %v1307_v11 = vadd.f32 %v1226_v42, %v1225_v13  ;;  %v1314_v54 = vadd.f32 %v1228_v48, %v1227_v55 }
 0x270   : > { %v1256_v47 = vrot.slane %v1255_v2, 1  ;;  %v1262_v28 = vadd.f32 %v1261_v12, %v1260_v51  ;;  %v1269_v36 = vadd.f32 %v1268_v45, %v1267_v60  ;;  %v1276_v18 = vadd.f32 %v1275_v38, %v1274_v58 }
 0x271   : > { %v1281_v53 = vadd.f32 %v1280_v44, %v1279_v8  ;;  %v1288_v41 = vadd.f32 %v1287_v46, %v1286_v3  ;;  %v1308_v1 = vrot.slane %v1307_v11, 4  ;;  %v1315_v37 = vrot.slane %v1314_v54, 4 }
 0x272   : > { %v1413_v29 = vrot.slane %v2880_v56, 7  ;;  %v2887_v32 = vadd.f32 %v1299_v19, %v2822_v33  ;;  %v1434_v7 = vrot.slane %v2882_v31, 7  ;;  %v1257_v10 = vadd.f32 %v1256_v47, %v1255_v2 }
 0x273   : > { %v1282_v26 = vrot.slane %v1281_v53, 2  ;;  %v1289_v59 = vrot.slane %v1288_v41, 2  ;;  %v1309_v13 = vadd.f32 %v1308_v1, %v1307_v11  ;;  %v1316_v42 = vadd.f32 %v1315_v37, %v1314_v54 }
 0x274   : > { %v1263_v55 = vrot.slane %v1262_v28, 1  ;;  %v1270_v48 = vrot.slane %v1269_v36, 1  ;;  %v1277_v49 = vrot.slane %v1276_v18, 1  ;;  %v1321_v50 = vadd.f32 %v2855_v17, %v2851_v15 }
 0x275   : > { %v1283_v23 = vadd.f32 %v1282_v26, %v1281_v53  ;;  %v1290_v25 = vadd.f32 %v1289_v59, %v1288_v41  ;;  %v1310_v35 = vrot.slane %v1309_v13, 2  ;;  %v1317_v21 = vrot.slane %v1316_v42, 2 }
 0x276   : > { %v1322_v52 = vrot.slane %v1321_v50, 4  ;;  %v1328_v57 = vadd.f32 %v2863_v27, %v2859_v22  ;;  %v1335_v6 = vadd.f32 %v1234_v30, %v2867_v20  ;;  %v1342_v9 = vadd.f32 %v1236_v40, %v1235_v63 }
 0x277   : > { %v1284_v34 = vrot.slane %v1283_v23, 1  ;;  %v1291_v61 = vrot.slane %v1290_v25, 1  ;;  %v1311_v62 = vadd.f32 %v1310_v35, %v1309_v13  ;;  %v1318_v14 = vadd.f32 %v1317_v21, %v1316_v42 }
 0x278   : > { %v1323_v19 = vadd.f32 %v1322_v52, %v1321_v50  ;;  %v1329_v24 = vrot.slane %v1328_v57, 4  ;;  %v1336_v51 = vrot.slane %v1335_v6, 4  ;;  %v1343_v60 = vrot.slane %v1342_v9, 4 }
 0x279   : > { %v1264_v15 = vadd.f32 %v1263_v55, %v1262_v28  ;;  %v1271_v17 = vadd.f32 %v1270_v48, %v1269_v36  ;;  %v1312_v58 = vrot.slane %v1311_v62, 1  ;;  %v1319_v8 = vrot.slane %v1318_v14, 1 }
 0x27a   : > { %v1324_v3 = vrot.slane %v1323_v19, 2  ;;  %v1330_v2 = vadd.f32 %v1329_v24, %v1328_v57  ;;  %v1337_v12 = vadd.f32 %v1336_v51, %v1335_v6  ;;  %v1344_v22 = vadd.f32 %v1343_v60, %v1342_v9 }
 0x27b   : > { %v1278_v27 = vadd.f32 %v1277_v49, %v1276_v18  ;;  %v1285_v20 = vadd.f32 %v1284_v34, %v1283_v23  ;;  %v1292_v30 = vadd.f32 %v1291_v61, %v1290_v25  ;;  %v1313_v63 = vadd.f32 %v1312_v58, %v1311_v62 }
 0x27c   : > { %v1325_v40 = vadd.f32 %v1324_v3, %v1323_v19  ;;  %v1331_v45 = vrot.slane %v1330_v2, 2  ;;  %v1338_v38 = vrot.slane %v1337_v12, 2  ;;  %v1345_v44 = vrot.slane %v1344_v22, 2 }
 0x27d   : > { %v1320_v46 = vadd.f32 %v1319_v8, %v1318_v14  ;;  %v1354_v11 = vrot.slane %v2802_v43, 4  ;;  %v1355_v54 = vrot.slane %v2802_v43, 5  ;;  %v1356_v47 = vrot.slane %v2802_v43, 6 }
 0x27e   : > { %v1326_v28 = vrot.slane %v1325_v40, 1  ;;  %v1332_v36 = vadd.f32 %v1331_v45, %v1330_v2  ;;  %v1339_v18 = vadd.f32 %v1338_v38, %v1337_v12  ;;  %v1346_v53 = vadd.f32 %v1345_v44, %v1344_v22 }
 0x27f   : > { %v1357_v41 = vrot.slane %v2802_v43, 7  ;;  %v1361_v1 = vrot.slane %v2822_v33, 4  ;;  %v1383_v37 = vadd.f32 %v1352_v39, %v1257_v10  ;;  %v1384_v26 = vadd.f32 %v1353_v16, %v1264_v15 }
 0x280   : > { %v1327_v59 = vadd.f32 %v1326_v28, %v1325_v40  ;;  %v1333_v13 = vrot.slane %v1332_v36, 1  ;;  %v1340_v42 = vrot.slane %v1339_v18, 1  ;;  %v1347_v55 = vrot.slane %v1346_v53, 1 }
 0x281   : > { %v1362_v48 = vrot.slane %v2822_v33, 5  ;;  %v1363_v49 = vrot.slane %v2822_v33, 6  ;;  %v1385_v50 = vadd.f32 %v1354_v11, %v1271_v17  ;;  %v1386_v23 = vadd.f32 %v1355_v54, %v1278_v27 }
 0x282   : > { %v1334_v25 = vadd.f32 %v1333_v13, %v1332_v36  ;;  %v1341_v35 = vadd.f32 %v1340_v42, %v1339_v18  ;;  %v1387_v21 = vadd.f32 %v1356_v47, %v1285_v20  ;;  %v1391_v39 = vadd.f32 %v1359_v0, %v1313_v63 }
 0x283   : > { %v1348_v10 = vadd.f32 %v1347_v55, %v1346_v53  ;;  %v1392_v43 = vadd.f32 %v1360_v5, %v1320_v46  ;;  %v1415_v16 = vsel %vm1414_vm5, %v1413_v29, %v2872_v4  ;;  %v1416_v52 = vrot.slane %v1383_v37, 6 }
 0x284   : > { %v1364_v57 = vrot.slane %v2822_v33, 7  ;;  %v1388_v6 = vadd.f32 %v1357_v41, %v1292_v30  ;;  %v1393_v9 = vadd.f32 %v1361_v1, %v1327_v59  ;;  %v1419_v34 = vrot.slane %v1384_v26, 5 }
 0x285   : > { %v1394_v61 = vadd.f32 %v1362_v48, %v1334_v25  ;;  %v1395_v62 = vadd.f32 %v1363_v49, %v1341_v35  ;;  %v1418_v0 = vsel %vm1417_vm6, %v1416_v52, %v1415_v16  ;;  %v1422_v14 = vrot.slane %v1385_v50, 4 }
 0x286   : > { %v1421_v5 = vsel %vm1420_vm7, %v1419_v34, %v1418_v0  ;;  %v1425_v19 = vrot.slane %v1386_v23, 3  ;;  %v1435_v4 = vsel %vm1414_vm5, %v1434_v7, %v2887_v32  ;;  %v1436_v56 = vrot.slane %v1391_v39, 6 }
 0x287   : > { %v1396_v33 = vadd.f32 %v1364_v57, %v1348_v10  ;;  %v1424_v29 = vsel %vm1423_vm8, %v1422_v14, %v1421_v5  ;;  %v1428_v24 = vrot.slane %v1387_v21, 2  ;;  %v1438_v51 = vrot.slane %v1392_v43, 5 }
 0x288   : > { %v1427_v60 = vsel %vm1426_vm9, %v1425_v19, %v1424_v29  ;;  %v1431_v15 = vrot.slane %v1388_v6, 1  ;;  %v1437_v17 = vsel %vm1417_vm6, %v1436_v56, %v1435_v4  ;;  %v1440_v58 = vrot.slane %v1393_v9, 4 }
 0x289   : > { %v1430_v31 = vsel %vm1429_vm10, %v1428_v24, %v1427_v60  ;;  %v1439_v32 = vsel %vm1420_vm7, %v1438_v51, %v1437_v17  ;;  %v1442_v7 = vrot.slane %v1394_v61, 3  ;;  %v1444_v2 = vrot.slane %v1395_v62, 2 }
 0x28a   : > { %v1433_v8 = vsel %vm1432_vm11, %v1431_v15, %v1430_v31  ;;  %v1441_v3 = vsel %vm1423_vm8, %v1440_v58, %v1439_v32  ;;  %v1446_v22 = vrot.slane %v1396_v33, 1 }
 0x28b   : > { %v1443_v12 = vsel %vm1426_vm9, %v1442_v7, %v1441_v3  ;;  %1450 = vst [vmem:[%s539_s26] sm:$0xff] %v1433_v8 }
 0x28c   : > { %v1445_v27 = vsel %vm1429_vm10, %v1444_v2, %v1443_v12 }
 0x28d   : > { %v1447_v20 = vsel %vm1432_vm11, %v1446_v22, %v1445_v27 }
 0x28e   : > { %1451 = vst [vmem:[%s539_s26 + $0x8] sm:$0xff] %v1447_v20 }
 0x28f   : > { %2171 = shalt.err (!%p2168_p3)
}
 0x290   : > { %s2172_s30 = scalar_lea.hbm %s2935_s11, 256  ;;  %s2176_s12 = scalar_lea.hbm %s3061_s9, 512 }
 0x291   : > { %p2173_p13 = scmp.ne.s32.totalorder %s2935_s11, %s2172_s30  ;;  %p2177_p2 = scmp.lt.s32.totalorder %s2935_s11, %s3061_s9 }
 0x292   : > { %p2178_p0 = scmp.lt.s32.totalorder %s2176_s12, %s2172_s30 }
 0x293   : > { %p2174_p7 = pnand %p2173_p13, %p3062_p5 }
 0x294   : > { %p2179_p1 = por %p2178_p0, %p2177_p2 }
 0x295   : > { %p2175_p9 = pneg %p2174_p7 }
 0x297   : > { %p2180_p12 = pnand %p2179_p1, %p2175_p9 }
 0x299   : > { %2183 = shalt.err (!%p2180_p12)
}
 0x29a   : > { %s2250_s7 = smov 128   ;;  %s2251_s3 = smov 8  }
 0x29b   : > { %1862 = dma.vmem_to_hbm [thread:$0]  (%p3062_p5), %s2937_s19, 256, %s2935_s11, %s1453_s13, %s2250_s7, %s2250_s7, %s2251_s3  }
 0x29c PF: > { %s3063_s27 = sld [smem:[#allocation20_spill]]  ;;  %p3066_p8 = scmp.ge.s32.totalorder %s2234_s20, 2 }
 0x29d   : > { %s3064_s14 = sld [smem:[#allocation22_spill]] }
 0x2a2   : > { %s1481_s1 = sand.u32 1, %s3063_s27  }
 0x2a3   : > { %p3065_p4 = scmp.ne.s32.totalorder %s3064_s14, 0  ;;  %s1482_s26 = scalar_lea.sflag [#allocation4], %s1481_s1 }
 0x2a5   : > { %p1888_p11 = pnand %p3066_p8, %p3065_p4 }
 0x2a7   : > { %p1889_p10 = pneg %p1888_p11 }
 0x2a9   : > { %2217 = dma.done.wait (%p1889_p10), %s1482_s26, 256  }
 0x2aa   : > { %2219 = vsyncadd (%p1889_p10), %s1482_s26, 4294967040  ;;  %s3067_s20 = sld [smem:[#allocation23_spill]]  ;;  %s3070_s17 = smov %s2226_s18 }
 0x2ab   : > { %s3068_s21 = sld [smem:[#allocation21_spill]] }
 0x2ac   : > { %s3069_s19 = sld [smem:[#allocation24_spill]] }
 0x2b0   : > { %p29_p6 = scmp.ge.s32.totalorder %s3067_s20, 4  }
 0x2b1   : > { %s3071_s18 = smov %s3068_s21 }
 0x2b2   :  { %31 = sbr.rel (!%p29_p6) target bundleno = 17 (0x11), region = 149 }
 0x2b7   :  { %1487 = vsyncpa [#allocation3], 1 }
 0x2b8   :  { %1489 = vsyncpa [#allocation3 + $0x1], 1 }
 0x2b9   :  { %1490 = vsyncpa [#allocation6], 1 }
 0x2ba   :  { %1492 = vsyncpa [#allocation6 + $0x1], 1 }
 0x2bb   :  { %1493 = vsyncpa [#allocation9], 1 }
 0x2bc   :  { %1494 = vsyncpa [#allocation12], 1 }
 0x2bd   :  { %1495 = vsyncpa [#allocation4], 1 }
 0x2be   :  { %1497 = vsyncpa [#allocation4 + $0x1], 1 }

</bundles_post_ra>
